<compile_context>
chip_gen: v6e
topology: v6e:2x2x1
jax: 0.10.0
libtpu: 0.0.40
codegen_flags: <defaults>
</compile_context>

<pallas_src>
import functools

import jax
import jax.numpy as jnp
from jax.experimental import pallas as pl
from jax.experimental.pallas import tpu as pltpu


TILE = 1024                      # vocab tile (tn == tk) for both matmuls
TM_CAP = 1024                    # max rows per tile
VMEM_LIMIT = 48 * 1024 * 1024    # safe on v5e/v6e (128 MiB) and v7x (64 MiB)


def _round_up(x, m):
    return ((x + m - 1) // m) * m


def _vocab_tile(vocab):
    """Full (padded) vocab when small, else 1024-wide tiles."""
    return min(TILE, _round_up(vocab, 128))


def _choose_tm(M, cap=TM_CAP):
    """Row tile and padded row count (avoids padding M up to a 256 multiple)."""
    m8 = _round_up(max(M, 8), 8)
    if m8 <= cap:
        return m8, m8                       # single row-tile, <= 7 padded rows
    m_pad = _round_up(M, 128)
    for tm in range(cap, 127, -8):
        if m_pad % tm == 0:
            return tm, m_pad
    return 128, m_pad                       # 128 always divides m_pad


# ----------------------------------------------------------------------------
# Kernel 1: base-model output head — fused LayerNorm(hidden) + LM-head matmul,
# tiled over (M, V). LayerNorm'd rows are cached in VMEM scratch and reused for
# every vocab tile of the same row tile (computed only when j == 0).
# ----------------------------------------------------------------------------
def ln_lmhead_kernel(x_ref, g_ref, b_ref, w_ref, bias_ref, o_ref, xn_ref):
    @pl.when(pl.program_id(1) == 0)
    def _():
        x = x_ref[...].astype(jnp.float32)                    # [tm, H]
        mu = jnp.mean(x, axis=-1, keepdims=True)
        var = jnp.mean((x - mu) ** 2, axis=-1, keepdims=True)
        xn = (x - mu) * jax.lax.rsqrt(var + 1e-5)
        xn_ref[...] = (xn * g_ref[...] + b_ref[...]).astype(xn_ref.dtype)

    o_ref[...] = (
        jnp.dot(xn_ref[...], w_ref[...], preferred_element_type=jnp.float32)
        + bias_ref[...]
    ).astype(o_ref.dtype)                                      # bf16 logits out


def base_model_head(x, ln_g, ln_b, w_in_out, bias, *, tm, tn):
    """x: [M, H] f32; w_in_out: [H, Vp] bf16; returns logits [M, Vp] bf16."""
    M, H = x.shape
    Vp = w_in_out.shape[1]
    assert M % tm == 0 and Vp % tn == 0
    return pl.pallas_call(
        ln_lmhead_kernel,
        out_shape=jax.ShapeDtypeStruct((M, Vp), jnp.bfloat16),
        grid_spec=pltpu.PrefetchScalarGridSpec(
            num_scalar_prefetch=0,
            grid=(M // tm, Vp // tn),
            in_specs=[
                pl.BlockSpec((tm, H), lambda i, j: (i, 0)),
                pl.BlockSpec((1, H), lambda i, j: (0, 0)),
                pl.BlockSpec((1, H), lambda i, j: (0, 0)),
                pl.BlockSpec((H, tn), lambda i, j: (0, j)),
                pl.BlockSpec((1, tn), lambda i, j: (0, j)),
            ],
            out_specs=pl.BlockSpec((tm, tn), lambda i, j: (i, j)),
            scratch_shapes=[pltpu.VMEM((tm, H), jnp.bfloat16)],
        ),
        compiler_params=pltpu.CompilerParams(
            # j carries the xn cache (written at j == 0) -> must stay sequential.
            dimension_semantics=("parallel", "arbitrary"),
            vmem_limit_bytes=VMEM_LIMIT,
        ),
    )(x, ln_g, ln_b, w_in_out, bias)


# ----------------------------------------------------------------------------
# Kernel 2: chart_embed = nn.Linear(V, V) — tiled matmul + bias. The f32 output
# block is resident across the K grid axis (its block index ignores k), so it
# doubles as the accumulator: initialized with the broadcast bias at k == 0.
# Grid order (N, M, K): N leads so v7x's two TensorCores split vocab columns.
# ----------------------------------------------------------------------------
def linear_kernel(x_ref, w_ref, b_ref, o_ref):
    @pl.when(pl.program_id(2) == 0)
    def _():
        o_ref[...] = jnp.broadcast_to(b_ref[...], o_ref.shape)

    o_ref[...] += jnp.dot(                                     # bf16 x bf16 MXU
        x_ref[...], w_ref[...], preferred_element_type=jnp.float32
    )


def chart_embed_pallas(x, w_in_out, bias, *, tm, tn, tk):
    """x: [M, Kp] bf16; w_in_out: [Kp, Np] bf16; bias: [1, Np] f32 -> [M, Np] f32."""
    M, K = x.shape
    _, N = w_in_out.shape
    assert M % tm == 0 and N % tn == 0 and K % tk == 0
    grid = (N // tn, M // tm, K // tk)
    return pl.pallas_call(
        linear_kernel,
        out_shape=jax.ShapeDtypeStruct((M, N), jnp.float32),
        grid_spec=pltpu.PrefetchScalarGridSpec(
            num_scalar_prefetch=0,
            grid=grid,
            in_specs=[
                pl.BlockSpec((tm, tk), lambda j, i, k: (i, k)),
                pl.BlockSpec((tk, tn), lambda j, i, k: (k, j)),
                pl.BlockSpec((1, tn), lambda j, i, k: (0, j)),
            ],
            out_specs=pl.BlockSpec((tm, tn), lambda j, i, k: (i, j)),
        ),
        compiler_params=pltpu.CompilerParams(
            dimension_semantics=("parallel", "parallel", "arbitrary"),
            vmem_limit_bytes=VMEM_LIMIT,
        ),
    )(x, w_in_out, bias)


# ----------------------------------------------------------------------------
# Full module forward (glue / padding in plain JAX, hot paths in Pallas).
# ----------------------------------------------------------------------------
@functools.partial(jax.jit, static_argnames=("vocab",))
def chart_layer_forward(inputs_embeds, params, *, vocab):
    B, S, H = inputs_embeds.shape
    M = B * S
    x2d = inputs_embeds.reshape(M, H)

    Vp = params["lm_w"].shape[1]
    tn = _vocab_tile(vocab)
    assert Vp % tn == 0
    tm, M_pad = _choose_tm(M)
    if M_pad != M:
        x2d = jnp.pad(x2d, ((0, M_pad - M), (0, 0)))

    # base_model(inputs_embeds=...)[0]  (stand-in: ln_f + lm_head -> bf16 logits).
    # Padded vocab columns of lm_w / lm_bias are zero -> padded logits are exactly
    # zero, safe to feed into chart_embed's K reduction.
    logits = base_model_head(
        x2d,
        params["ln_g"],          # [1, H]
        params["ln_b"],          # [1, H]
        params["lm_w"],          # [H, Vp] bf16
        params["lm_bias"],       # [1, Vp] f32
        tm=tm, tn=tn,
    )                            # [M_pad, Vp] bf16

    # chart_embed(model_output)
    out2d = chart_embed_pallas(
        logits,
        params["chart_w"],       # [Vp, Vp] bf16 (already transposed from torch)
        params["chart_bias"],    # [1, Vp] f32
        tm=tm, tn=tn, tk=tn,
    )                            # [M_pad, Vp] f32

    return out2d[:M, :vocab].reshape(B, S, vocab)


def make_params(key, hidden, vocab):
    """Raw parameters in the PyTorch convention (Linear weight = [out, in])."""
    ks = jax.random.split(key, 4)
    return {
        "ln_g": jnp.ones((hidden,), jnp.float32),
        "ln_b": jnp.zeros((hidden,), jnp.float32),
        "lm_w_t": 0.02 * jax.random.normal(ks[0], (vocab, hidden), jnp.float32),
        "lm_bias": 0.02 * jax.random.normal(ks[1], (vocab,), jnp.float32),
        "chart_w_t": 0.02 * jax.random.normal(ks[2], (vocab, vocab), jnp.float32),
        "chart_bias": 0.02 * jax.random.normal(ks[3], (vocab,), jnp.float32),
    }


def prepare_params(raw):
    """Transpose to [in, out], zero-pad vocab to a tile multiple, cast weights bf16."""
    hidden = raw["ln_g"].shape[0]
    vocab = raw["lm_bias"].shape[0]
    tile = _vocab_tile(vocab)
    v_pad = _round_up(vocab, tile)
    pv = v_pad - vocab

    lm_w = jnp.pad(raw["lm_w_t"].T, ((0, 0), (0, pv))).astype(jnp.bfloat16)
    chart_w = jnp.pad(raw["chart_w_t"].T, ((0, pv), (0, pv))).astype(jnp.bfloat16)
    return {
        "ln_g": raw["ln_g"].reshape(1, hidden),
        "ln_b": raw["ln_b"].reshape(1, hidden),
        "lm_w": lm_w,                                            # [H, Vp] bf16
        "lm_bias": jnp.pad(raw["lm_bias"], (0, pv)).reshape(1, v_pad),
        "chart_w": chart_w,                                      # [Vp, Vp] bf16
        "chart_bias": jnp.pad(raw["chart_bias"], (0, pv)).reshape(1, v_pad),
    }


def reference_forward(inputs_embeds, raw):
    B, S, H = inputs_embeds.shape
    x = inputs_embeds.reshape(B * S, H).astype(jnp.float32)
    mu = jnp.mean(x, axis=-1, keepdims=True)
    var = jnp.mean((x - mu) ** 2, axis=-1, keepdims=True)
    xn = (x - mu) * jax.lax.rsqrt(var + 1e-5) * raw["ln_g"] + raw["ln_b"]
    logits = xn @ raw["lm_w_t"].T + raw["lm_bias"]
    out = logits @ raw["chart_w_t"].T + raw["chart_bias"]
    return out.reshape(B, S, -1)


if __name__ == "__main__":
    # Small shapes consistent with the module: vocab scaled down from 50257.
    B, S, H, V = 2, 8, 32, 256

    key = jax.random.PRNGKey(0)
    k_x, k_p = jax.random.split(key)
    inputs_embeds = jax.random.normal(k_x, (B, S, H), jnp.float32)

    raw = make_params(k_p, H, V)
    params = prepare_params(raw)

    out = chart_layer_forward(inputs_embeds, params, vocab=V)
    out = jax.block_until_ready(out)

    ref = reference_forward(inputs_embeds, raw)
    assert out.shape == (B, S, V), out.shape
    # bf16 weight/activation streaming vs pure-f32 reference -> mixed abs/rel check.
    max_err = float(jnp.max(jnp.abs(out - ref)))
    ref_scale = float(jnp.max(jnp.abs(ref)))
    assert max_err <= 5e-3 + 1e-2 * ref_scale, (max_err, ref_scale)

    print("KERNEL_OK")
</pallas_src>

<mosaic_0001>
module attributes {stable_mosaic.version = 11 : i64} {
  func.func @linear_kernel(%arg0: i32, %arg1: i32, %arg2: i32, %arg3: memref<16x256xbf16, #tpu.memory_space<vmem>>, %arg4: memref<256x256xbf16, #tpu.memory_space<vmem>>, %arg5: memref<1x256xf32, #tpu.memory_space<vmem>>, %arg6: memref<16x256xf32, #tpu.memory_space<vmem>>) attributes {dimension_semantics = [#tpu.dimension_semantics<parallel>, #tpu.dimension_semantics<parallel>, #tpu.dimension_semantics<arbitrary>], iteration_bounds = array<i64: 1, 1, 1>, scalar_prefetch = 0 : i64, scratch_operands = 0 : i64, tpu.core_type = #tpu.core_type<tc>, window_params = [{transform_indices = @transform_0, window_bounds = array<i64: 16, 256>}, {transform_indices = @transform_1, window_bounds = array<i64: 256, 256>}, {transform_indices = @transform_2, window_bounds = array<i64: 1, 256>}, {transform_indices = @transform_3, window_bounds = array<i64: 16, 256>}]} {
    %c0_i32 = arith.constant 0 : i32
    %0 = arith.cmpi eq, %arg2, %c0_i32 : i32
    %1 = arith.extui %0 : i1 to i32
    %c0_i32_0 = arith.constant 0 : i32
    %2 = arith.cmpi ne, %1, %c0_i32_0 : i32
    scf.if %2 {
      %c0_8 = arith.constant 0 : index
      %c0_9 = arith.constant 0 : index
      %9 = vector.load %arg5[%c0_8, %c0_9] : memref<1x256xf32, #tpu.memory_space<vmem>>, vector<1x256xf32>
      %10 = vector.shape_cast %9 : vector<1x256xf32> to vector<1x256xf32>
      %11 = vector.broadcast %10 : vector<1x256xf32> to vector<16x256xf32>
      %c0_10 = arith.constant 0 : index
      %c0_11 = arith.constant 0 : index
      %12 = vector.load %arg6[%c0_10, %c0_11] : memref<16x256xf32, #tpu.memory_space<vmem>>, vector<16x256xf32>
      tpu.vector_store %arg6[%c0_10, %c0_11], %11 {strides = array<i32>} : memref<16x256xf32, #tpu.memory_space<vmem>>, vector<16x256xf32>,
    } else {
    }
    %c0 = arith.constant 0 : index
    %c0_1 = arith.constant 0 : index
    %3 = vector.load %arg6[%c0, %c0_1] : memref<16x256xf32, #tpu.memory_space<vmem>>, vector<16x256xf32>
    %c0_2 = arith.constant 0 : index
    %c0_3 = arith.constant 0 : index
    %4 = vector.load %arg3[%c0_2, %c0_3] : memref<16x256xbf16, #tpu.memory_space<vmem>>, vector<16x256xbf16>
    %c0_4 = arith.constant 0 : index
    %c0_5 = arith.constant 0 : index
    %5 = vector.load %arg4[%c0_4, %c0_5] : memref<256x256xbf16, #tpu.memory_space<vmem>>, vector<256x256xbf16>
    %cst = arith.constant dense<0.000000e+00> : vector<16x256xf32>
    %6 = tpu.matmul %4, %5, %cst {dimension_numbers = #tpu.dot_dimension_numbers<[1], [0], [0], [1], [0, 0, 1, 1], [], []>} : vector<16x256xbf16>, vector<256x256xbf16>, vector<16x256xf32> -> vector<16x256xf32>
    %7 = arith.addf %3, %6 : vector<16x256xf32>
    %c0_6 = arith.constant 0 : index
    %c0_7 = arith.constant 0 : index
    %8 = vector.load %arg6[%c0_6, %c0_7] : memref<16x256xf32, #tpu.memory_space<vmem>>, vector<16x256xf32>
    tpu.vector_store %arg6[%c0_6, %c0_7], %7 {strides = array<i32>} : memref<16x256xf32, #tpu.memory_space<vmem>>, vector<16x256xf32>,
    return
  }
  func.func @transform_0(%arg0: i32, %arg1: i32, %arg2: i32) -> (i32, i32) {
    %c0_i32 = arith.constant 0 : i32
    return %arg1, %arg2 : i32, i32
  }
  func.func @transform_1(%arg0: i32, %arg1: i32, %arg2: i32) -> (i32, i32) {
    %c0_i32 = arith.constant 0 : i32
    return %arg2, %arg0 : i32, i32
  }
  func.func @transform_2(%arg0: i32, %arg1: i32, %arg2: i32) -> (i32, i32) {
    %c0_i32 = arith.constant 0 : i32
    %c0_i32_0 = arith.constant 0 : i32
    return %c0_i32, %arg0 : i32, i32
  }
  func.func @transform_3(%arg0: i32, %arg1: i32, %arg2: i32) -> (i32, i32) {
    %c0_i32 = arith.constant 0 : i32
    return %arg1, %arg0 : i32, i32
  }
}

module attributes {stable_mosaic.version = 11 : i64} {
  func.func @ln_lmhead_kernel(%arg0: i32, %arg1: i32, %arg2: memref<16x32xf32, #tpu.memory_space<vmem>>, %arg3: memref<1x32xf32, #tpu.memory_space<vmem>>, %arg4: memref<1x32xf32, #tpu.memory_space<vmem>>, %arg5: memref<32x256xbf16, #tpu.memory_space<vmem>>, %arg6: memref<1x256xf32, #tpu.memory_space<vmem>>, %arg7: memref<16x256xbf16, #tpu.memory_space<vmem>>, %arg8: memref<16x32xbf16, #tpu.memory_space<vmem>>) attributes {dimension_semantics = [#tpu.dimension_semantics<parallel>, #tpu.dimension_semantics<arbitrary>], iteration_bounds = array<i64: 1, 1>, scalar_prefetch = 0 : i64, scratch_operands = 1 : i64, tpu.core_type = #tpu.core_type<tc>, window_params = [{transform_indices = @transform_0, window_bounds = array<i64: 16, 32>}, {pipeline_mode = #tpu.pipeline_mode<synchronous>, transform_indices = @transform_1, window_bounds = array<i64: 1, 32>}, {pipeline_mode = #tpu.pipeline_mode<synchronous>, transform_indices = @transform_2, window_bounds = array<i64: 1, 32>}, {transform_indices = @transform_3, window_bounds = array<i64: 32, 256>}, {transform_indices = @transform_4, window_bounds = array<i64: 1, 256>}, {transform_indices = @transform_5, window_bounds = array<i64: 16, 256>}]} {
    %c0_i32 = arith.constant 0 : i32
    %0 = arith.cmpi eq, %arg1, %c0_i32 : i32
    %1 = arith.extui %0 : i1 to i32
    %c0_i32_0 = arith.constant 0 : i32
    %2 = arith.cmpi ne, %1, %c0_i32_0 : i32
    scf.if %2 {
      %c0_8 = arith.constant 0 : index
      %c0_9 = arith.constant 0 : index
      %11 = vector.load %arg2[%c0_8, %c0_9] : memref<16x32xf32, #tpu.memory_space<vmem>>, vector<16x32xf32>
      %cst_10 = arith.constant dense<0.000000e+00> : vector<16xf32>
      %12 = vector.multi_reduction <add>, %11, %cst_10 [1] : vector<16x32xf32> to vector<16xf32>
      %13 = vector.shape_cast %12 : vector<16xf32> to vector<16x1xf32>
      %cst_11 = arith.constant 3.200000e+01 : f32
      %14 = vector.broadcast %cst_11 : f32 to vector<16x1xf32>
      %15 = arith.divf %13, %14 : vector<16x1xf32>
      %16 = vector.broadcast %15 : vector<16x1xf32> to vector<16x32xf32>
      %17 = arith.subf %11, %16 : vector<16x32xf32>
      %18 = arith.mulf %17, %17 : vector<16x32xf32>
      %cst_12 = arith.constant dense<0.000000e+00> : vector<16xf32>
      %19 = vector.multi_reduction <add>, %18, %cst_12 [1] : vector<16x32xf32> to vector<16xf32>
      %20 = vector.shape_cast %19 : vector<16xf32> to vector<16x1xf32>
      %cst_13 = arith.constant 3.200000e+01 : f32
      %21 = vector.broadcast %cst_13 : f32 to vector<16x1xf32>
      %22 = arith.divf %20, %21 : vector<16x1xf32>
      %23 = vector.broadcast %15 : vector<16x1xf32> to vector<16x32xf32>
      %24 = arith.subf %11, %23 : vector<16x32xf32>
      %cst_14 = arith.constant 9.99999974E-6 : f32
      %25 = vector.broadcast %cst_14 : f32 to vector<16x1xf32>
      %26 = arith.addf %22, %25 : vector<16x1xf32>
      %27 = math.rsqrt %26 : vector<16x1xf32>
      %28 = vector.broadcast %27 : vector<16x1xf32> to vector<16x32xf32>
      %29 = arith.mulf %24, %28 : vector<16x32xf32>
      %c0_15 = arith.constant 0 : index
      %c0_16 = arith.constant 0 : index
      %30 = vector.load %arg3[%c0_15, %c0_16] : memref<1x32xf32, #tpu.memory_space<vmem>>, vector<1x32xf32>
      %31 = vector.broadcast %30 : vector<1x32xf32> to vector<16x32xf32>
      %32 = arith.mulf %29, %31 : vector<16x32xf32>
      %c0_17 = arith.constant 0 : index
      %c0_18 = arith.constant 0 : index
      %33 = vector.load %arg4[%c0_17, %c0_18] : memref<1x32xf32, #tpu.memory_space<vmem>>, vector<1x32xf32>
      %34 = vector.broadcast %33 : vector<1x32xf32> to vector<16x32xf32>
      %35 = arith.addf %32, %34 : vector<16x32xf32>
      %36 = arith.truncf %35 : vector<16x32xf32> to vector<16x32xbf16>
      %c0_19 = arith.constant 0 : index
      %c0_20 = arith.constant 0 : index
      %37 = vector.load %arg8[%c0_19, %c0_20] : memref<16x32xbf16, #tpu.memory_space<vmem>>, vector<16x32xbf16>
      tpu.vector_store %arg8[%c0_19, %c0_20], %36 {strides = array<i32>} : memref<16x32xbf16, #tpu.memory_space<vmem>>, vector<16x32xbf16>,
    } else {
    }
    %c0 = arith.constant 0 : index
    %c0_1 = arith.constant 0 : index
    %3 = vector.load %arg8[%c0, %c0_1] : memref<16x32xbf16, #tpu.memory_space<vmem>>, vector<16x32xbf16>
    %c0_2 = arith.constant 0 : index
    %c0_3 = arith.constant 0 : index
    %4 = vector.load %arg5[%c0_2, %c0_3] : memref<32x256xbf16, #tpu.memory_space<vmem>>, vector<32x256xbf16>
    %cst = arith.constant dense<0.000000e+00> : vector<16x256xf32>
    %5 = tpu.matmul %3, %4, %cst {dimension_numbers = #tpu.dot_dimension_numbers<[1], [0], [0], [1], [0, 0, 1, 1], [], []>} : vector<16x32xbf16>, vector<32x256xbf16>, vector<16x256xf32> -> vector<16x256xf32>
    %c0_4 = arith.constant 0 : index
    %c0_5 = arith.constant 0 : index
    %6 = vector.load %arg6[%c0_4, %c0_5] : memref<1x256xf32, #tpu.memory_space<vmem>>, vector<1x256xf32>
    %7 = vector.broadcast %6 : vector<1x256xf32> to vector<16x256xf32>
    %8 = arith.addf %5, %7 : vector<16x256xf32>
    %9 = arith.truncf %8 : vector<16x256xf32> to vector<16x256xbf16>
    %c0_6 = arith.constant 0 : index
    %c0_7 = arith.constant 0 : index
    %10 = vector.load %arg7[%c0_6, %c0_7] : memref<16x256xbf16, #tpu.memory_space<vmem>>, vector<16x256xbf16>
    tpu.vector_store %arg7[%c0_6, %c0_7], %9 {strides = array<i32>} : memref<16x256xbf16, #tpu.memory_space<vmem>>, vector<16x256xbf16>,
    return
  }
  func.func @transform_0(%arg0: i32, %arg1: i32) -> (i32, i32) {
    %c0_i32 = arith.constant 0 : i32
    %c0_i32_0 = arith.constant 0 : i32
    return %arg0, %c0_i32 : i32, i32
  }
  func.func @transform_1(%arg0: i32, %arg1: i32) -> (i32, i32) {
    %c0_i32 = arith.constant 0 : i32
    %c0_i32_0 = arith.constant 0 : i32
    %c0_i32_1 = arith.constant 0 : i32
    return %c0_i32, %c0_i32_0 : i32, i32
  }
  func.func @transform_2(%arg0: i32, %arg1: i32) -> (i32, i32) {
    %c0_i32 = arith.constant 0 : i32
    %c0_i32_0 = arith.constant 0 : i32
    %c0_i32_1 = arith.constant 0 : i32
    return %c0_i32, %c0_i32_0 : i32, i32
  }
  func.func @transform_3(%arg0: i32, %arg1: i32) -> (i32, i32) {
    %c0_i32 = arith.constant 0 : i32
    %c0_i32_0 = arith.constant 0 : i32
    return %c0_i32, %arg1 : i32, i32
  }
  func.func @transform_4(%arg0: i32, %arg1: i32) -> (i32, i32) {
    %c0_i32 = arith.constant 0 : i32
    %c0_i32_0 = arith.constant 0 : i32
    return %c0_i32, %arg1 : i32, i32
  }
  func.func @transform_5(%arg0: i32, %arg1: i32) -> (i32, i32) {
    %c0_i32 = arith.constant 0 : i32
    return %arg0, %arg1 : i32, i32
  }
}

</mosaic_0001>

<bundles_post_ra>
// kernel: chart_layer_forward.2
= control target key start
LH: loop header
LB: loop body
LE: loop exit
PB: predicated region body
PF: predicated region fallthrough
CT: control target
= control target key end

     0   :  { %10 = vsyncpa [#allocation4], 0  ;;  %s359_s0 = inlined_call_operand.hbm [shape: f32[16,32], index: 0, kind: input, shape index: {}]   ;;  %s360_s1 = inlined_call_operand.vmem [shape: f32[1,32], index: 1, kind: input, shape index: {}]   ;;  %s361_s2 = inlined_call_operand.vmem [shape: f32[1,32], index: 2, kind: input, shape index: {}]   ;;  %s362_s3 = inlined_call_operand.hbm [shape: bf16[32,256], index: 3, kind: input, shape index: {}]   ;;  %s363_s4 = inlined_call_operand.vmem [shape: f32[1,256], index: 4, kind: input, shape index: {}]   ;;  %s364_s5 = inlined_call_operand.vmem [shape: bf16[16,256], index: 5, kind: output, shape index: {}]  }
   0x1   :  { %11 = vsyncpa [#allocation6], 0  ;;  %s298_s18 = smov [#allocation3]  }
   0x2   :  { %s17_s19 = sshll.u32 %s298_s18, 4  ;;  %s18_s19 = int_to_ptr.vmem [resolvable:$true] %s17_s19 }
   0x3   :  { %s262_s20 = scalar_lea.vmem %s18_s19, 256  ;;  %p267_p1 = scmp.lt.s32.totalorder %s18_s19, %s18_s19 }
   0x4   :  { %p263_p0 = scmp.ne.s32.totalorder %s18_s19, %s262_s20  ;;  %p268_p2 = scmp.lt.s32.totalorder %s262_s20, %s262_s20 }
   0x6   :  { %p269_p3 = por %p268_p2, %p267_p1 }
   0x8   :  { %p270_p4 = pnand %p269_p3, %p263_p0 }
   0xa   :  { %273 = shalt.err (!%p270_p4)
}
   0xb   :  { %s299_s21 = smov 128   ;;  %s300_s22 = smov 8  }
   0xc   :  { %23 = dma.hbm_to_vmem [thread:$0]  %s359_s0, 256, %s18_s19, [#allocation4], %s299_s21, %s299_s21, %s300_s22  }
   0xd   :  { %s301_s25 = smov [#allocation5]  }
   0xe   :  { %s33_s26 = sshll.u32 %s301_s25, 4  ;;  %s34_s26 = int_to_ptr.vmem [resolvable:$true] %s33_s26 }
   0xf   :  { %s282_s27 = scalar_lea.vmem %s34_s26, 512  ;;  %p287_p6 = scmp.lt.s32.totalorder %s34_s26, %s34_s26 }
  0x10   :  { %p283_p5 = scmp.ne.s32.totalorder %s34_s26, %s282_s27  ;;  %p288_p7 = scmp.lt.s32.totalorder %s282_s27, %s282_s27 }
  0x12   :  { %p289_p8 = por %p288_p7, %p287_p6 }
  0x14   :  { %p290_p9 = pnand %p289_p8, %p283_p5 }
  0x16   :  { %293 = shalt.err (!%p290_p9)
}
  0x17   :  { %39 = dma.hbm_to_vmem [thread:$0]  %s362_s3, 512, %s34_s26, [#allocation6], %s299_s21, %s299_s21, %s300_s22  }
  0x18   :  { %294 = dma.done.wait [#allocation4], 256  }
  0x19   :  { %295 = vsyncadd [#allocation4], 4294967040 }
  0x1a   :  { %296 = dma.done.wait [#allocation6], 512  }
  0x1b   :  { %297 = vsyncadd [#allocation6], 4294966784  ;;  %vm55_vm0 = vcmask 261120   ;;  %v53_v0 = vld [vmem:[#allocation3] sm:$0xff]  ;;  %v54_v1 = vld [vmem:[#allocation3 + $0x8] sm:$0xff]  ;;  %v302_v18 = vmov 0   ;;  %v120_v38 = vlaneseq }
  0x1c   :  { %v56_v2 = vsel %vm55_vm0, %v53_v0, 0.0  ;;  %v59_v3 = vsel %vm55_vm0, %v54_v1, 0.0  ;;  %v243_v14 = vld [vmem:[#allocation5 + $0x14] ss:$8 sps:$4 sm:$0xff]   ;;  %v245_v15 = vld [vmem:[#allocation5 + $0x10] ss:$8 sps:$4 sm:$0xff]   ;;  %191 = vmatprep.mubr.bf16.mxu0 %v302_v18 }
  0x1d   :  { %57 = vadd.xlane.f32.xlu0 %v56_v2  ;;  %v246_v16 = vld [vmem:[#allocation5 + $0x4] ss:$8 sps:$4 sm:$0xff]   ;;  %171 = vmatprep.subr.bf16.mxu0 %v243_v14  ;;  %v248_v17 = vld [vmem:[#allocation5] ss:$8 sps:$4 sm:$0xff]   ;;  %vm109_vm1 = vcmask 257024   ;;  %v121_v39 = vshrl.u32 %v120_v38, 7 }
  0x1e   :  { %172 = vmatpush1.bf16.msra.mxu0 %v245_v15  ;;  %v222_v26 = vld [vmem:[%s360_s1] ss:$0 sm:$0xff] }
  0x1f   :  { %173 = vmatprep.subr.bf16.mxu0 %v246_v16  ;;  %v223_v28 = vld [vmem:[%s361_s2] ss:$0 sm:$0xff]  ;;  %v122_v40 = vsub.s32 0, %v121_v39  ;;  %v126_v41 = vsub.s32 1, %v121_v39 }
  0x20   :  { %v118_v42 = vld [vmem:[%s363_s4] sm:$0x3] }
  0x21   :  { %60 = vadd.xlane.f32.xlu0 %v59_v3  ;;  %v123_v43 = vrot.slane %v118_v42, %v122_v40  ;;  %v127_v44 = vrot.slane %v118_v42, %v126_v41 }
  0x22   :  { %174 = vmatpush1.bf16.msra.mxu0 %v248_v17 }
  0xa6   :  { %v58_v4 = vpop.xlane.xlu0 %57 }
  0xa7   :  { %v63_v5 = vmul.f32 0.03125, %v58_v4 }
  0xa9   :  { %v65_v6 = vsub.f32 %v53_v0, %v63_v5 }
  0xaa   :  { %v61_v7 = vpop.xlane.xlu0 %60 }
  0xab   :  { %v64_v8 = vmul.f32 0.03125, %v61_v7  ;;  %v67_v9 = vmul.f32 %v65_v6, %v65_v6 }
  0xad   :  { %v66_v10 = vsub.f32 %v54_v1, %v64_v8  ;;  %v69_v11 = vsel %vm55_vm0, %v67_v9, 0.0 }
  0xae   :  { %70 = vadd.xlane.f32.xlu1 %v69_v11 }
  0xaf   :  { %v68_v12 = vmul.f32 %v66_v10, %v66_v10 }
  0xb1   :  { %v72_v13 = vsel %vm55_vm0, %v68_v12, 0.0 }
  0xb2   :  { %73 = vadd.xlane.f32.xlu1 %v72_v13 }
 0x137   :  { %v71_v19 = vpop.xlane.xlu1 %70 }
 0x138   :  { %v75_v20 = vmul.f32 0.03125, %v71_v19 }
 0x13a   :  { %v77_v21 = vadd.f32 1e-05, %v75_v20 }
 0x13b   :  { %v74_v22 = vpop.xlane.xlu1 %73 }
 0x13c   :  { %250 = vrsqrt.f32 %v77_v21  ;;  %v76_v23 = vmul.f32 0.03125, %v74_v22 }
 0x13e   :  { %v78_v24 = vadd.f32 1e-05, %v76_v23 }
 0x140   :  { %252 = vrsqrt.f32 %v78_v24 }
 0x149   :  { %v251_v25 = vpop.eup %250 }
 0x14a   :  { %v81_v27 = vmul.f32 %v251_v25, %v65_v6 }
 0x14c   :  { %v90_v29 = vmul.f32 %v222_v26, %v81_v27 }
 0x14d   :  { %v253_v30 = vpop.eup %252 }
 0x14e   :  { %v99_v31 = vadd.f32 %v223_v28, %v90_v29  ;;  %v82_v32 = vmul.f32 %v253_v30, %v66_v10 }
 0x150   :  { %v234_v33 = vpack.c.bf16 %v99_v31, %v99_v31  ;;  %v91_v34 = vmul.f32 %v222_v26, %v82_v32 }
 0x152   :  { %110 = vst.msk [vmem:[#allocation2] sm:$0xf] %vm109_vm1, %v234_v33  ;;  %v100_v35 = vadd.f32 %v223_v28, %v91_v34 }
 0x154   :  { %v235_v36 = vpack.c.bf16 %v100_v35, %v100_v35 }
 0x156   :  { %111 = vst.msk [vmem:[#allocation2 + $0x4] sm:$0xf] %vm109_vm1, %v235_v36 }
 0x15d   :  { %v249_v37 = vld [vmem:[#allocation2] sm:$0xff]  }
 0x15e   :  { %231 = vmatmul.mubr.msk.bf16.vlgmr.msra.gmra.mxu0 %vm55_vm0, %v249_v37 }
 0x21e   :  { %v193_v45 = vpop.f32.mrf.mxu0 }
 0x21f   :  { %v194_v47 = vadd.f32 %v193_v45, %v123_v43 }
 0x220   :  { %v195_v46 = vpop.f32.mrf.mxu0 }
 0x221   :  { %v196_v48 = vadd.f32 %v195_v46, %v127_v44 }
 0x222   :  { %v197_v49 = vpop.f32.mrf.mxu0 }
 0x223   :  { %v236_v50 = vpack.c.bf16 %v196_v48, %v194_v47  ;;  %v198_v52 = vadd.f32 %v197_v49, %v123_v43 }
 0x224   :  { %v199_v51 = vpop.f32.mrf.mxu0 }
 0x225   :  { %214 = vst [vmem:[%s364_s5] sm:$0xff] %v236_v50  ;;  %v200_v53 = vadd.f32 %v199_v51, %v127_v44 }
 0x227   :  { %v237_v54 = vpack.c.bf16 %v200_v53, %v198_v52 }
 0x229   :  { %215 = vst [vmem:[%s364_s5 + $0x8] sm:$0xff] %v237_v54 }
 0x22a   :  { %220 = vsyncpa [#allocation4], 1 }
 0x22b   :  { %221 = vsyncpa [#allocation6], 1 }

// kernel: chart_layer_forward.3
= control target key start
LH: loop header
LB: loop body
LE: loop exit
PB: predicated region body
PF: predicated region fallthrough
CT: control target
= control target key end

     0   :  { %8 = vsyncpa [#allocation3], 0  ;;  %s501_s0 = inlined_call_operand.vmem [shape: bf16[16,256], index: 0, kind: input, shape index: {}]   ;;  %s502_s1 = inlined_call_operand.hbm [shape: bf16[256,256], index: 1, kind: input, shape index: {}]   ;;  %s503_s2 = inlined_call_operand.vmem [shape: f32[1,256], index: 2, kind: input, shape index: {}]   ;;  %s504_s3 = inlined_call_operand.hbm [shape: f32[16,256], index: 3, kind: output, shape index: {}]  }
   0x1   :  { %9 = vsyncpa [#allocation4], 0  ;;  %s460_s12 = smov [#allocation2]  }
   0x2   :  { %s17_s13 = sshll.u32 %s460_s12, 4  ;;  %s18_s13 = int_to_ptr.vmem [resolvable:$true] %s17_s13 }
   0x3   :  { %s424_s14 = scalar_lea.vmem %s18_s13, 4096  ;;  %p429_p1 = scmp.lt.s32.totalorder %s18_s13, %s18_s13 }
   0x4   :  { %p425_p0 = scmp.ne.s32.totalorder %s18_s13, %s424_s14  ;;  %p430_p2 = scmp.lt.s32.totalorder %s424_s14, %s424_s14 }
   0x6   :  { %p431_p3 = por %p430_p2, %p429_p1 }
   0x8   :  { %p432_p4 = pnand %p431_p3, %p425_p0 }
   0xa   :  { %435 = shalt.err (!%p432_p4)
}
   0xb   :  { %s461_s15 = smov 128   ;;  %s462_s16 = smov 8  }
   0xc   :  { %23 = dma.hbm_to_vmem [thread:$0]  %s502_s1, 4096, %s18_s13, [#allocation3], %s461_s15, %s461_s15, %s462_s16  }
   0xd   :  { %456 = dma.done.wait [#allocation3], 4096  }
   0xe   :  { %457 = vsyncadd [#allocation3], 4294963200  ;;  %v365_v0 = vld [vmem:[#allocation2 + $0x74] ss:$8 sps:$4 sm:$0xff]   ;;  %v367_v1 = vld [vmem:[#allocation2 + $0x70] ss:$8 sps:$4 sm:$0xff]   ;;  %v35_v34 = vlaneseq }
   0xf   :  { %257 = vmatprep.subr.bf16.mxu0 %v365_v0  ;;  %v368_v2 = vld [vmem:[#allocation2 + $0x64] ss:$8 sps:$4 sm:$0xff]   ;;  %v370_v3 = vld [vmem:[#allocation2 + $0x60] ss:$8 sps:$4 sm:$0xff]   ;;  %v371_v4 = vld [vmem:[#allocation2 + $0x54] ss:$8 sps:$4 sm:$0xff]  }
  0x10   :  { %258 = vmatpush1.bf16.msra.mxu0 %v367_v1  ;;  %v373_v5 = vld [vmem:[#allocation2 + $0x50] ss:$8 sps:$4 sm:$0xff]   ;;  %v374_v6 = vld [vmem:[#allocation2 + $0x44] ss:$8 sps:$4 sm:$0xff]   ;;  %v376_v7 = vld [vmem:[#allocation2 + $0x40] ss:$8 sps:$4 sm:$0xff]  }
  0x11   :  { %259 = vmatprep.subr.bf16.mxu0 %v368_v2  ;;  %v377_v8 = vld [vmem:[#allocation2 + $0x34] ss:$8 sps:$4 sm:$0xff]   ;;  %v379_v9 = vld [vmem:[#allocation2 + $0x30] ss:$8 sps:$4 sm:$0xff]   ;;  %v380_v10 = vld [vmem:[#allocation2 + $0x24] ss:$8 sps:$4 sm:$0xff]  }
  0x12   :  { %v382_v11 = vld [vmem:[#allocation2 + $0x20] ss:$8 sps:$4 sm:$0xff]   ;;  %v383_v12 = vld [vmem:[#allocation2 + $0x14] ss:$8 sps:$4 sm:$0xff]   ;;  %v415_v13 = vld [vmem:[%s501_s0 + $0x4] ss:$8 sps:$4 sm:$0xff]  }
  0x13   :  { %v385_v14 = vld [vmem:[#allocation2 + $0x10] ss:$8 sps:$4 sm:$0xff]   ;;  %v386_v15 = vld [vmem:[#allocation2 + $0x4] ss:$8 sps:$4 sm:$0xff]   ;;  %289 = vmatprep.mubr.bf16.mxu0 %v415_v13  ;;  %v388_v16 = vld [vmem:[#allocation2] ss:$8 sps:$4 sm:$0xff]  }
  0x14   :  { %260 = vmatpush1.bf16.msra.mxu0 %v370_v3  ;;  %v389_v17 = vld [vmem:[#allocation2 + $0xf4] ss:$8 sps:$4 sm:$0xff]   ;;  %v391_v18 = vld [vmem:[#allocation2 + $0xf0] ss:$8 sps:$4 sm:$0xff]   ;;  %v392_v19 = vld [vmem:[#allocation2 + $0xe4] ss:$8 sps:$4 sm:$0xff]  }
  0x15   :  { %261 = vmatprep.subr.bf16.mxu0 %v371_v4  ;;  %v394_v20 = vld [vmem:[#allocation2 + $0xe0] ss:$8 sps:$4 sm:$0xff]   ;;  %v395_v21 = vld [vmem:[#allocation2 + $0xd4] ss:$8 sps:$4 sm:$0xff]   ;;  %v397_v22 = vld [vmem:[#allocation2 + $0xd0] ss:$8 sps:$4 sm:$0xff]  }
  0x16   :  { %v398_v23 = vld [vmem:[#allocation2 + $0xc4] ss:$8 sps:$4 sm:$0xff]   ;;  %v400_v24 = vld [vmem:[#allocation2 + $0xc0] ss:$8 sps:$4 sm:$0xff]   ;;  %v401_v25 = vld [vmem:[#allocation2 + $0xb4] ss:$8 sps:$4 sm:$0xff]  }
  0x17   :  { %v403_v26 = vld [vmem:[#allocation2 + $0xb0] ss:$8 sps:$4 sm:$0xff]   ;;  %v404_v27 = vld [vmem:[#allocation2 + $0xa4] ss:$8 sps:$4 sm:$0xff]   ;;  %v406_v28 = vld [vmem:[#allocation2 + $0xa0] ss:$8 sps:$4 sm:$0xff]  }
  0x18   :  { %262 = vmatpush1.bf16.msra.mxu0 %v373_v5  ;;  %v407_v29 = vld [vmem:[#allocation2 + $0x94] ss:$8 sps:$4 sm:$0xff]   ;;  %v409_v30 = vld [vmem:[#allocation2 + $0x90] ss:$8 sps:$4 sm:$0xff]   ;;  %v410_v31 = vld [vmem:[#allocation2 + $0x84] ss:$8 sps:$4 sm:$0xff]  }
  0x19   :  { %263 = vmatprep.subr.bf16.mxu0 %v374_v6  ;;  %v412_v32 = vld [vmem:[#allocation2 + $0x80] ss:$8 sps:$4 sm:$0xff]   ;;  %v36_v35 = vshrl.u32 %v35_v34, 7  ;;  %s463_s24 = smov [#allocation5]  }
  0x1a   :  { %v413_v33 = vld [vmem:[%s501_s0] ss:$8 sps:$4 sm:$0xff]   ;;  %s313_s25 = sshll.u32 %s463_s24, 4  ;;  %s314_s25 = int_to_ptr.vmem [resolvable:$true] %s313_s25 }
  0x1b   :  { %v37_v36 = vsub.s32 0, %v36_v35  ;;  %v33_v37 = vld [vmem:[%s503_s2] sm:$0x3]  ;;  %v41_v38 = vsub.s32 1, %v36_v35  ;;  %s436_s0 = scalar_lea.vmem %s314_s25, 512  ;;  %p441_p6 = scmp.lt.s32.totalorder %s314_s25, %s314_s25 }
  0x1c   :  { %264 = vmatpush1.bf16.msra.mxu0 %v376_v7  ;;  %p437_p5 = scmp.ne.s32.totalorder %s314_s25, %s436_s0  ;;  %p442_p7 = scmp.lt.s32.totalorder %s436_s0, %s436_s0 }
  0x1d   :  { %265 = vmatprep.subr.bf16.mxu0 %v377_v8  ;;  %v38_v39 = vrot.slane %v33_v37, %v37_v36  ;;  %v42_v40 = vrot.slane %v33_v37, %v41_v38 }
  0x1e   :  { %p443_p8 = por %p442_p7, %p441_p6 }
  0x20   :  { %266 = vmatpush1.bf16.msra.mxu0 %v379_v9  ;;  %p444_p9 = pnand %p443_p8, %p437_p5 }
  0x21   :  { %267 = vmatprep.subr.bf16.mxu0 %v380_v10 }
  0x24   :  { %268 = vmatpush1.bf16.msra.mxu0 %v382_v11 }
  0x25   :  { %269 = vmatprep.subr.bf16.mxu0 %v383_v12 }
  0x28   :  { %270 = vmatpush1.bf16.msra.mxu0 %v385_v14 }
  0x29   :  { %271 = vmatprep.subr.bf16.mxu0 %v386_v15 }
  0x2c   :  { %272 = vmatpush1.bf16.msra.mxu0 %v388_v16 }
  0x2d   :  { %273 = vmatprep.subr.bf16.mxu0 %v389_v17 }
  0x30   :  { %274 = vmatpush2.bf16.msra.mxu0 %v391_v18 }
  0x31   :  { %275 = vmatprep.subr.bf16.mxu0 %v392_v19 }
  0x34   :  { %276 = vmatpush2.bf16.msra.mxu0 %v394_v20 }
  0x35   :  { %277 = vmatprep.subr.bf16.mxu0 %v395_v21 }
  0x38   :  { %278 = vmatpush2.bf16.msra.mxu0 %v397_v22 }
  0x39   :  { %279 = vmatprep.subr.bf16.mxu0 %v398_v23 }
  0x3c   :  { %280 = vmatpush2.bf16.msra.mxu0 %v400_v24 }
  0x3d   :  { %281 = vmatprep.subr.bf16.mxu0 %v401_v25 }
  0x40   :  { %282 = vmatpush2.bf16.msra.mxu0 %v403_v26 }
  0x41   :  { %283 = vmatprep.subr.bf16.mxu0 %v404_v27 }
  0x44   :  { %284 = vmatpush2.bf16.msra.mxu0 %v406_v28 }
  0x45   :  { %285 = vmatprep.subr.bf16.mxu0 %v407_v29 }
  0x48   :  { %286 = vmatpush2.bf16.msra.mxu0 %v409_v30 }
  0x49   :  { %287 = vmatprep.subr.bf16.mxu0 %v410_v31 }
  0x4c   :  { %288 = vmatpush2.bf16.msra.mxu0 %v412_v32 }
  0x4f   :  { %290 = vmatmul.mubr.bf16.vlgmr.msra.gmra.mxu0 %v413_v33 }
 0x10f   :  { %v291_v41 = vpop.f32.mrf.mxu0 }
 0x110   :  { %v300_v42 = vadd.f32 %v291_v41, %v38_v39 }
 0x111   :  { %v293_v43 = vpop.f32.mrf.mxu0 }
 0x112   :  { %304 = vst [vmem:[#allocation5] sm:$0xff] %v300_v42  ;;  %v301_v44 = vadd.f32 %v293_v43, %v42_v40 }
 0x113   :  { %v295_v45 = vpop.f32.mrf.mxu0 }
 0x114   :  { %305 = vst [vmem:[#allocation5 + $0x8] sm:$0xff] %v301_v44  ;;  %v302_v46 = vadd.f32 %v295_v45, %v38_v39 }
 0x115   :  { %v297_v47 = vpop.f32.mrf.mxu0 }
 0x116   :  { %306 = vst [vmem:[#allocation5 + $0x10] sm:$0xff] %v302_v46  ;;  %v303_v48 = vadd.f32 %v297_v47, %v42_v40 }
 0x118   :  { %307 = vst [vmem:[#allocation5 + $0x18] sm:$0xff] %v303_v48 }
 0x119   :  { %447 = shalt.err (!%p444_p9)
}
 0x11a   :  { %s464_s2 = smov 256   ;;  %s465_s26 = smov 16  }
 0x11b   :  { %319 = dma.vmem_to_hbm [thread:$0]  %s314_s25, 512, %s504_s3, [#allocation4], %s464_s2, %s464_s2, %s465_s26  }
 0x11c   :  { %458 = dma.done.wait [#allocation4], 512  }
 0x11d   :  { %459 = vsyncadd [#allocation4], 4294966784 }
 0x11e   :  { %323 = vsyncpa [#allocation3], 1 }
 0x11f   :  { %324 = vsyncpa [#allocation4], 1 }

</bundles_post_ra>
